<compile_context>
chip_gen: v5e
topology: v5e:2x2
jax: 0.10.0
libtpu: 0.0.40
codegen_flags: <defaults>
</compile_context>

<pallas_src>
import jax
import jax.numpy as jnp
from jax.experimental import pallas as pl
from jax.experimental.pallas import tpu as pltpu


def lstm_fc_kernel(x_ref, w_ref, out_ref):
    """Full LSTM recurrence + final Linear, entirely in VMEM / vregs.

    x_ref   : (B, T)      input sequence, batch on sublanes, time on lanes
    w_ref   : (H+3, 4H)   packed weights (see prepare_params):
                            row 0        : 0.5-scaled(i/f/o) W_ih (input_size=1)
                            row 1        : 0.5-scaled(i/f/o) (b_ih + b_hh)
                            rows 2..H+1  : row k = 0.5-scaled(i/f/o) W_hh[:, k]^T
                            row H+2      : fc.weight in cols [0,H), fc.bias in col H
    out_ref : (B, 1)
    """
    B, T = x_ref.shape
    _, four_h = w_ref.shape
    H = four_h // 4

    xx = x_ref[...]                                   # (B, T)   one vreg
    w = w_ref[...]                                    # (H+3, 4H) one vreg

    # Loop-invariant broadcasts, hoisted (JAX does not CSE broadcast_in_dim).
    wih = jnp.broadcast_to(w[0:1, :], (B, four_h))    # (B, 4H)
    bst = jnp.broadcast_to(w[1:2, :], (B, four_h))    # (B, 4H)
    whh = [jnp.broadcast_to(w[2 + k:3 + k, :], (B, four_h)) for k in range(H)]
    fcw = w[2 + H:3 + H, 0:H]                         # (1, H)
    fcb = w[2 + H:3 + H, H:H + 1]                     # (1, 1)

    # sigmoid-via-tanh affine constants (gate order i|f|g|o along lanes).
    blk = jnp.ones((1, H), jnp.float32)
    aff_a = jnp.broadcast_to(
        jnp.concatenate([0.5 * blk, 0.5 * blk, blk, 0.5 * blk], axis=1),
        (B, four_h))
    aff_b = jnp.broadcast_to(
        jnp.concatenate([0.5 * blk, 0.5 * blk, 0.0 * blk, 0.5 * blk], axis=1),
        (B, four_h))

    # ---- hoisted input projection (independent of the recurrence) ----------
    # gx[t][b, g*H+j] = 0.5s * (x[b,t] * W_ih[g*H+j, 0] + b[g*H+j])
    gx = [xx[:, t:t + 1] * wih + bst for t in range(T)]      # T x (B, 4H)

    # ---- recurrence, fully unrolled (T is static) ---------------------------
    h = jnp.zeros((B, H), jnp.float32)
    c = jnp.zeros((B, H), jnp.float32)
    for t in range(T):
        pre = gx[t]                                    # (B, 4H)
        if t > 0:                                      # h == 0 at t == 0
            m = [h[:, k:k + 1] * whh[k] for k in range(H)]
            while len(m) > 1:                          # balanced add tree
                m = ([m[i] + m[i + 1] for i in range(0, len(m) - 1, 2)]
                     + ([m[-1]] if len(m) % 2 else []))
            pre = pre + m[0]
        t_all = jnp.tanh(pre)                          # one EUP push, all gates
        act = aff_a * t_all + aff_b                    # i/f/o -> sigmoid, g -> tanh
        i_g = act[:, 0 * H:1 * H]
        f_g = act[:, 1 * H:2 * H]
        g_g = act[:, 2 * H:3 * H]
        o_g = act[:, 3 * H:4 * H]
        c = f_g * c + i_g * g_g
        h = o_g * jnp.tanh(c)                          # second EUP push

    # ---- final Linear: out = h @ fc.weight^T + fc.bias (VPU mul + lane sum) --
    out_ref[...] = jnp.sum(h * fcw, axis=1, keepdims=True) + fcb


def prepare_params(params):
    """One-time packing of all weights into a single (H+3, 4H) f32 slab.

    i/f/o gate columns are pre-scaled by 0.5 so the kernel can use
    sigmoid(z) = 0.5*tanh(z/2) + 0.5 with a single tanh per step (exact).
    """
    H = params["w_hh"].shape[1]
    w_ih = params["w_ih"].astype(jnp.float32).reshape(4 * H)       # (4H,)
    w_hh = params["w_hh"].astype(jnp.float32)                      # (4H, H)
    bias = (params["b_ih"] + params["b_hh"]).astype(jnp.float32)   # (4H,)
    fc_w = params["fc_w"].astype(jnp.float32).reshape(H)           # (H,)
    fc_b = params["fc_b"].astype(jnp.float32).reshape(1)           # (1,)

    scale = jnp.concatenate([jnp.full((2 * H,), 0.5, jnp.float32),   # i, f
                             jnp.ones((H,), jnp.float32),            # g
                             jnp.full((H,), 0.5, jnp.float32)])      # o

    wih_row = (scale * w_ih)[None, :]                  # (1, 4H)
    b_row = (scale * bias)[None, :]                    # (1, 4H)
    whh_rows = scale[None, :] * w_hh.T                 # (H, 4H): row k = W_hh[:,k]^T

    fc_row = jnp.zeros((1, 4 * H), jnp.float32)
    fc_row = fc_row.at[0, 0:H].set(fc_w)
    fc_row = fc_row.at[0, H].set(fc_b[0])

    return jnp.concatenate([wih_row, b_row, whh_rows, fc_row], axis=0)  # (H+3, 4H)


def time_series_model(x, w_slab):
    """x: (B, T, 1) float32 (PyTorch batch_first). w_slab: prepare_params output."""
    B, T, _ = x.shape
    x2d = x.reshape(B, T).astype(jnp.float32)          # trailing squeeze: bitcast

    return pl.pallas_call(
        lstm_fc_kernel,
        out_shape=jax.ShapeDtypeStruct((B, 1), jnp.float32),
        in_specs=[
            pl.BlockSpec(memory_space=pltpu.MemorySpace.VMEM),
            pl.BlockSpec(memory_space=pltpu.MemorySpace.VMEM),
        ],
        out_specs=pl.BlockSpec(memory_space=pltpu.MemorySpace.VMEM),
    )(x2d, w_slab)


def init_params(hidden_size=4, seed=42):
    """Deterministic init matching nn.LSTM / nn.Linear parameter shapes."""
    H = hidden_size
    stdv = 1.0 / jnp.sqrt(jnp.float32(H))
    keys = jax.random.split(jax.random.PRNGKey(seed), 6)
    u = lambda k, shape: jax.random.uniform(k, shape, jnp.float32, -stdv, stdv)
    return {
        "w_ih": u(keys[0], (4 * H, 1)),   # weight_ih_l0
        "w_hh": u(keys[1], (4 * H, H)),   # weight_hh_l0
        "b_ih": u(keys[2], (4 * H,)),     # bias_ih_l0
        "b_hh": u(keys[3], (4 * H,)),     # bias_hh_l0
        "fc_w": u(keys[4], (1, H)),       # fc.weight
        "fc_b": u(keys[5], (1,)),         # fc.bias
    }


def reference_forward(x, params):
    """Pure-JAX reference of the PyTorch forward (for correctness check)."""
    B, T, _ = x.shape
    H = params["w_hh"].shape[1]
    wih, whh = params["w_ih"], params["w_hh"]
    b = params["b_ih"] + params["b_hh"]
    h = jnp.zeros((B, H), jnp.float32)
    c = jnp.zeros((B, H), jnp.float32)
    for t in range(T):
        x_t = x[:, t, :]                                     # (B, 1)
        gates = x_t @ wih.T + h @ whh.T + b                  # (B, 4H)
        i_g = jax.nn.sigmoid(gates[:, 0:H])
        f_g = jax.nn.sigmoid(gates[:, H:2 * H])
        g_g = jnp.tanh(gates[:, 2 * H:3 * H])
        o_g = jax.nn.sigmoid(gates[:, 3 * H:4 * H])
        c = f_g * c + i_g * g_g
        h = o_g * jnp.tanh(c)
    return h @ params["fc_w"].T + params["fc_b"]


if __name__ == "__main__":
    batch, look_back, hidden = 2, 8, 4
    params = init_params(hidden_size=hidden, seed=42)
    w_slab = prepare_params(params)          # one-time weight packing (not per call)
    x = jax.random.normal(jax.random.PRNGKey(0), (batch, look_back, 1),
                          dtype=jnp.float32)

    out = jax.block_until_ready(time_series_model(x, w_slab))

    ref = reference_forward(x, params)
    assert out.shape == (batch, 1)
    assert jnp.allclose(out, ref, atol=1e-5, rtol=1e-5)

    print("KERNEL_OK")
</pallas_src>

<mosaic_0001>
module attributes {stable_mosaic.version = 11 : i64} {
  func.func @lstm_fc_kernel(%arg0: memref<2x8xf32, #tpu.memory_space<vmem>>, %arg1: memref<7x16xf32, #tpu.memory_space<vmem>>, %arg2: memref<2x1xf32, #tpu.memory_space<vmem>>) attributes {dimension_semantics = [], scalar_prefetch = 0 : i64, scratch_operands = 0 : i64, tpu.core_type = #tpu.core_type<tc>} {
    %c0 = arith.constant 0 : index
    %c0_0 = arith.constant 0 : index
    %0 = vector.load %arg0[%c0, %c0_0] : memref<2x8xf32, #tpu.memory_space<vmem>>, vector<2x8xf32>
    %c0_1 = arith.constant 0 : index
    %c0_2 = arith.constant 0 : index
    %1 = vector.load %arg1[%c0_1, %c0_2] : memref<7x16xf32, #tpu.memory_space<vmem>>, vector<7x16xf32>
    %2 = vector.extract_strided_slice %1 {offsets = [0, 0], sizes = [1, 16], strides = [1, 1]} : vector<7x16xf32> to vector<1x16xf32>
    %3 = vector.shape_cast %2 : vector<1x16xf32> to vector<1x16xf32>
    %4 = vector.broadcast %3 : vector<1x16xf32> to vector<2x16xf32>
    %5 = vector.extract_strided_slice %1 {offsets = [1, 0], sizes = [1, 16], strides = [1, 1]} : vector<7x16xf32> to vector<1x16xf32>
    %6 = vector.shape_cast %5 : vector<1x16xf32> to vector<1x16xf32>
    %7 = vector.broadcast %6 : vector<1x16xf32> to vector<2x16xf32>
    %8 = vector.extract_strided_slice %1 {offsets = [2, 0], sizes = [1, 16], strides = [1, 1]} : vector<7x16xf32> to vector<1x16xf32>
    %9 = vector.shape_cast %8 : vector<1x16xf32> to vector<1x16xf32>
    %10 = vector.broadcast %9 : vector<1x16xf32> to vector<2x16xf32>
    %11 = vector.extract_strided_slice %1 {offsets = [3, 0], sizes = [1, 16], strides = [1, 1]} : vector<7x16xf32> to vector<1x16xf32>
    %12 = vector.shape_cast %11 : vector<1x16xf32> to vector<1x16xf32>
    %13 = vector.broadcast %12 : vector<1x16xf32> to vector<2x16xf32>
    %14 = vector.extract_strided_slice %1 {offsets = [4, 0], sizes = [1, 16], strides = [1, 1]} : vector<7x16xf32> to vector<1x16xf32>
    %15 = vector.shape_cast %14 : vector<1x16xf32> to vector<1x16xf32>
    %16 = vector.broadcast %15 : vector<1x16xf32> to vector<2x16xf32>
    %17 = vector.extract_strided_slice %1 {offsets = [5, 0], sizes = [1, 16], strides = [1, 1]} : vector<7x16xf32> to vector<1x16xf32>
    %18 = vector.shape_cast %17 : vector<1x16xf32> to vector<1x16xf32>
    %19 = vector.broadcast %18 : vector<1x16xf32> to vector<2x16xf32>
    %20 = vector.extract_strided_slice %1 {offsets = [6, 0], sizes = [1, 4], strides = [1, 1]} : vector<7x16xf32> to vector<1x4xf32>
    %21 = vector.extract_strided_slice %1 {offsets = [6, 4], sizes = [1, 1], strides = [1, 1]} : vector<7x16xf32> to vector<1x1xf32>
    %cst = arith.constant 1.000000e+00 : f32
    %22 = vector.broadcast %cst : f32 to vector<1x4xf32>
    %cst_3 = arith.constant 5.000000e-01 : f32
    %23 = vector.broadcast %cst_3 : f32 to vector<1x4xf32>
    %24 = arith.mulf %23, %22 : vector<1x4xf32>
    %cst_4 = arith.constant 5.000000e-01 : f32
    %25 = vector.broadcast %cst_4 : f32 to vector<1x4xf32>
    %26 = arith.mulf %25, %22 : vector<1x4xf32>
    %cst_5 = arith.constant 5.000000e-01 : f32
    %27 = vector.broadcast %cst_5 : f32 to vector<1x4xf32>
    %28 = arith.mulf %27, %22 : vector<1x4xf32>
    %29 = tpu.concatenate %24, %26, %22, %28 in 1 : vector<1x4xf32>, vector<1x4xf32>, vector<1x4xf32>, vector<1x4xf32> -> vector<1x16xf32>
    %30 = vector.shape_cast %29 : vector<1x16xf32> to vector<1x16xf32>
    %31 = vector.broadcast %30 : vector<1x16xf32> to vector<2x16xf32>
    %cst_6 = arith.constant 5.000000e-01 : f32
    %32 = vector.broadcast %cst_6 : f32 to vector<1x4xf32>
    %33 = arith.mulf %32, %22 : vector<1x4xf32>
    %cst_7 = arith.constant 5.000000e-01 : f32
    %34 = vector.broadcast %cst_7 : f32 to vector<1x4xf32>
    %35 = arith.mulf %34, %22 : vector<1x4xf32>
    %cst_8 = arith.constant 0.000000e+00 : f32
    %36 = vector.broadcast %cst_8 : f32 to vector<1x4xf32>
    %37 = arith.mulf %36, %22 : vector<1x4xf32>
    %cst_9 = arith.constant 5.000000e-01 : f32
    %38 = vector.broadcast %cst_9 : f32 to vector<1x4xf32>
    %39 = arith.mulf %38, %22 : vector<1x4xf32>
    %40 = tpu.concatenate %33, %35, %37, %39 in 1 : vector<1x4xf32>, vector<1x4xf32>, vector<1x4xf32>, vector<1x4xf32> -> vector<1x16xf32>
    %41 = vector.shape_cast %40 : vector<1x16xf32> to vector<1x16xf32>
    %42 = vector.broadcast %41 : vector<1x16xf32> to vector<2x16xf32>
    %43 = vector.extract_strided_slice %0 {offsets = [0, 0], sizes = [2, 1], strides = [1, 1]} : vector<2x8xf32> to vector<2x1xf32>
    %44 = vector.broadcast %43 : vector<2x1xf32> to vector<2x16xf32>
    %45 = arith.mulf %44, %4 : vector<2x16xf32>
    %46 = arith.addf %45, %7 : vector<2x16xf32>
    %47 = vector.extract_strided_slice %0 {offsets = [0, 1], sizes = [2, 1], strides = [1, 1]} : vector<2x8xf32> to vector<2x1xf32>
    %48 = vector.broadcast %47 : vector<2x1xf32> to vector<2x16xf32>
    %49 = arith.mulf %48, %4 : vector<2x16xf32>
    %50 = arith.addf %49, %7 : vector<2x16xf32>
    %51 = vector.extract_strided_slice %0 {offsets = [0, 2], sizes = [2, 1], strides = [1, 1]} : vector<2x8xf32> to vector<2x1xf32>
    %52 = vector.broadcast %51 : vector<2x1xf32> to vector<2x16xf32>
    %53 = arith.mulf %52, %4 : vector<2x16xf32>
    %54 = arith.addf %53, %7 : vector<2x16xf32>
    %55 = vector.extract_strided_slice %0 {offsets = [0, 3], sizes = [2, 1], strides = [1, 1]} : vector<2x8xf32> to vector<2x1xf32>
    %56 = vector.broadcast %55 : vector<2x1xf32> to vector<2x16xf32>
    %57 = arith.mulf %56, %4 : vector<2x16xf32>
    %58 = arith.addf %57, %7 : vector<2x16xf32>
    %59 = vector.extract_strided_slice %0 {offsets = [0, 4], sizes = [2, 1], strides = [1, 1]} : vector<2x8xf32> to vector<2x1xf32>
    %60 = vector.broadcast %59 : vector<2x1xf32> to vector<2x16xf32>
    %61 = arith.mulf %60, %4 : vector<2x16xf32>
    %62 = arith.addf %61, %7 : vector<2x16xf32>
    %63 = vector.extract_strided_slice %0 {offsets = [0, 5], sizes = [2, 1], strides = [1, 1]} : vector<2x8xf32> to vector<2x1xf32>
    %64 = vector.broadcast %63 : vector<2x1xf32> to vector<2x16xf32>
    %65 = arith.mulf %64, %4 : vector<2x16xf32>
    %66 = arith.addf %65, %7 : vector<2x16xf32>
    %67 = vector.extract_strided_slice %0 {offsets = [0, 6], sizes = [2, 1], strides = [1, 1]} : vector<2x8xf32> to vector<2x1xf32>
    %68 = vector.broadcast %67 : vector<2x1xf32> to vector<2x16xf32>
    %69 = arith.mulf %68, %4 : vector<2x16xf32>
    %70 = arith.addf %69, %7 : vector<2x16xf32>
    %71 = vector.extract_strided_slice %0 {offsets = [0, 7], sizes = [2, 1], strides = [1, 1]} : vector<2x8xf32> to vector<2x1xf32>
    %72 = vector.broadcast %71 : vector<2x1xf32> to vector<2x16xf32>
    %73 = arith.mulf %72, %4 : vector<2x16xf32>
    %74 = arith.addf %73, %7 : vector<2x16xf32>
    %cst_10 = arith.constant 0.000000e+00 : f32
    %75 = vector.broadcast %cst_10 : f32 to vector<2x4xf32>
    %76 = math.tanh %46 : vector<2x16xf32>
    %77 = arith.mulf %31, %76 : vector<2x16xf32>
    %78 = arith.addf %77, %42 : vector<2x16xf32>
    %79 = vector.extract_strided_slice %78 {offsets = [0, 0], sizes = [2, 4], strides = [1, 1]} : vector<2x16xf32> to vector<2x4xf32>
    %80 = vector.extract_strided_slice %78 {offsets = [0, 4], sizes = [2, 4], strides = [1, 1]} : vector<2x16xf32> to vector<2x4xf32>
    %81 = vector.extract_strided_slice %78 {offsets = [0, 8], sizes = [2, 4], strides = [1, 1]} : vector<2x16xf32> to vector<2x4xf32>
    %82 = vector.extract_strided_slice %78 {offsets = [0, 12], sizes = [2, 4], strides = [1, 1]} : vector<2x16xf32> to vector<2x4xf32>
    %83 = arith.mulf %80, %75 : vector<2x4xf32>
    %84 = arith.mulf %79, %81 : vector<2x4xf32>
    %85 = arith.addf %83, %84 : vector<2x4xf32>
    %86 = math.tanh %85 : vector<2x4xf32>
    %87 = arith.mulf %82, %86 : vector<2x4xf32>
    %88 = vector.extract_strided_slice %87 {offsets = [0, 0], sizes = [2, 1], strides = [1, 1]} : vector<2x4xf32> to vector<2x1xf32>
    %89 = vector.broadcast %88 : vector<2x1xf32> to vector<2x16xf32>
    %90 = arith.mulf %89, %10 : vector<2x16xf32>
    %91 = vector.extract_strided_slice %87 {offsets = [0, 1], sizes = [2, 1], strides = [1, 1]} : vector<2x4xf32> to vector<2x1xf32>
    %92 = vector.broadcast %91 : vector<2x1xf32> to vector<2x16xf32>
    %93 = arith.mulf %92, %13 : vector<2x16xf32>
    %94 = vector.extract_strided_slice %87 {offsets = [0, 2], sizes = [2, 1], strides = [1, 1]} : vector<2x4xf32> to vector<2x1xf32>
    %95 = vector.broadcast %94 : vector<2x1xf32> to vector<2x16xf32>
    %96 = arith.mulf %95, %16 : vector<2x16xf32>
    %97 = vector.extract_strided_slice %87 {offsets = [0, 3], sizes = [2, 1], strides = [1, 1]} : vector<2x4xf32> to vector<2x1xf32>
    %98 = vector.broadcast %97 : vector<2x1xf32> to vector<2x16xf32>
    %99 = arith.mulf %98, %19 : vector<2x16xf32>
    %100 = arith.addf %90, %93 : vector<2x16xf32>
    %101 = arith.addf %96, %99 : vector<2x16xf32>
    %102 = arith.addf %100, %101 : vector<2x16xf32>
    %103 = arith.addf %50, %102 : vector<2x16xf32>
    %104 = math.tanh %103 : vector<2x16xf32>
    %105 = arith.mulf %31, %104 : vector<2x16xf32>
    %106 = arith.addf %105, %42 : vector<2x16xf32>
    %107 = vector.extract_strided_slice %106 {offsets = [0, 0], sizes = [2, 4], strides = [1, 1]} : vector<2x16xf32> to vector<2x4xf32>
    %108 = vector.extract_strided_slice %106 {offsets = [0, 4], sizes = [2, 4], strides = [1, 1]} : vector<2x16xf32> to vector<2x4xf32>
    %109 = vector.extract_strided_slice %106 {offsets = [0, 8], sizes = [2, 4], strides = [1, 1]} : vector<2x16xf32> to vector<2x4xf32>
    %110 = vector.extract_strided_slice %106 {offsets = [0, 12], sizes = [2, 4], strides = [1, 1]} : vector<2x16xf32> to vector<2x4xf32>
    %111 = arith.mulf %108, %85 : vector<2x4xf32>
    %112 = arith.mulf %107, %109 : vector<2x4xf32>
    %113 = arith.addf %111, %112 : vector<2x4xf32>
    %114 = math.tanh %113 : vector<2x4xf32>
    %115 = arith.mulf %110, %114 : vector<2x4xf32>
    %116 = vector.extract_strided_slice %115 {offsets = [0, 0], sizes = [2, 1], strides = [1, 1]} : vector<2x4xf32> to vector<2x1xf32>
    %117 = vector.broadcast %116 : vector<2x1xf32> to vector<2x16xf32>
    %118 = arith.mulf %117, %10 : vector<2x16xf32>
    %119 = vector.extract_strided_slice %115 {offsets = [0, 1], sizes = [2, 1], strides = [1, 1]} : vector<2x4xf32> to vector<2x1xf32>
    %120 = vector.broadcast %119 : vector<2x1xf32> to vector<2x16xf32>
    %121 = arith.mulf %120, %13 : vector<2x16xf32>
    %122 = vector.extract_strided_slice %115 {offsets = [0, 2], sizes = [2, 1], strides = [1, 1]} : vector<2x4xf32> to vector<2x1xf32>
    %123 = vector.broadcast %122 : vector<2x1xf32> to vector<2x16xf32>
    %124 = arith.mulf %123, %16 : vector<2x16xf32>
    %125 = vector.extract_strided_slice %115 {offsets = [0, 3], sizes = [2, 1], strides = [1, 1]} : vector<2x4xf32> to vector<2x1xf32>
    %126 = vector.broadcast %125 : vector<2x1xf32> to vector<2x16xf32>
    %127 = arith.mulf %126, %19 : vector<2x16xf32>
    %128 = arith.addf %118, %121 : vector<2x16xf32>
    %129 = arith.addf %124, %127 : vector<2x16xf32>
    %130 = arith.addf %128, %129 : vector<2x16xf32>
    %131 = arith.addf %54, %130 : vector<2x16xf32>
    %132 = math.tanh %131 : vector<2x16xf32>
    %133 = arith.mulf %31, %132 : vector<2x16xf32>
    %134 = arith.addf %133, %42 : vector<2x16xf32>
    %135 = vector.extract_strided_slice %134 {offsets = [0, 0], sizes = [2, 4], strides = [1, 1]} : vector<2x16xf32> to vector<2x4xf32>
    %136 = vector.extract_strided_slice %134 {offsets = [0, 4], sizes = [2, 4], strides = [1, 1]} : vector<2x16xf32> to vector<2x4xf32>
    %137 = vector.extract_strided_slice %134 {offsets = [0, 8], sizes = [2, 4], strides = [1, 1]} : vector<2x16xf32> to vector<2x4xf32>
    %138 = vector.extract_strided_slice %134 {offsets = [0, 12], sizes = [2, 4], strides = [1, 1]} : vector<2x16xf32> to vector<2x4xf32>
    %139 = arith.mulf %136, %113 : vector<2x4xf32>
    %140 = arith.mulf %135, %137 : vector<2x4xf32>
    %141 = arith.addf %139, %140 : vector<2x4xf32>
    %142 = math.tanh %141 : vector<2x4xf32>
    %143 = arith.mulf %138, %142 : vector<2x4xf32>
    %144 = vector.extract_strided_slice %143 {offsets = [0, 0], sizes = [2, 1], strides = [1, 1]} : vector<2x4xf32> to vector<2x1xf32>
    %145 = vector.broadcast %144 : vector<2x1xf32> to vector<2x16xf32>
    %146 = arith.mulf %145, %10 : vector<2x16xf32>
    %147 = vector.extract_strided_slice %143 {offsets = [0, 1], sizes = [2, 1], strides = [1, 1]} : vector<2x4xf32> to vector<2x1xf32>
    %148 = vector.broadcast %147 : vector<2x1xf32> to vector<2x16xf32>
    %149 = arith.mulf %148, %13 : vector<2x16xf32>
    %150 = vector.extract_strided_slice %143 {offsets = [0, 2], sizes = [2, 1], strides = [1, 1]} : vector<2x4xf32> to vector<2x1xf32>
    %151 = vector.broadcast %150 : vector<2x1xf32> to vector<2x16xf32>
    %152 = arith.mulf %151, %16 : vector<2x16xf32>
    %153 = vector.extract_strided_slice %143 {offsets = [0, 3], sizes = [2, 1], strides = [1, 1]} : vector<2x4xf32> to vector<2x1xf32>
    %154 = vector.broadcast %153 : vector<2x1xf32> to vector<2x16xf32>
    %155 = arith.mulf %154, %19 : vector<2x16xf32>
    %156 = arith.addf %146, %149 : vector<2x16xf32>
    %157 = arith.addf %152, %155 : vector<2x16xf32>
    %158 = arith.addf %156, %157 : vector<2x16xf32>
    %159 = arith.addf %58, %158 : vector<2x16xf32>
    %160 = math.tanh %159 : vector<2x16xf32>
    %161 = arith.mulf %31, %160 : vector<2x16xf32>
    %162 = arith.addf %161, %42 : vector<2x16xf32>
    %163 = vector.extract_strided_slice %162 {offsets = [0, 0], sizes = [2, 4], strides = [1, 1]} : vector<2x16xf32> to vector<2x4xf32>
    %164 = vector.extract_strided_slice %162 {offsets = [0, 4], sizes = [2, 4], strides = [1, 1]} : vector<2x16xf32> to vector<2x4xf32>
    %165 = vector.extract_strided_slice %162 {offsets = [0, 8], sizes = [2, 4], strides = [1, 1]} : vector<2x16xf32> to vector<2x4xf32>
    %166 = vector.extract_strided_slice %162 {offsets = [0, 12], sizes = [2, 4], strides = [1, 1]} : vector<2x16xf32> to vector<2x4xf32>
    %167 = arith.mulf %164, %141 : vector<2x4xf32>
    %168 = arith.mulf %163, %165 : vector<2x4xf32>
    %169 = arith.addf %167, %168 : vector<2x4xf32>
    %170 = math.tanh %169 : vector<2x4xf32>
    %171 = arith.mulf %166, %170 : vector<2x4xf32>
    %172 = vector.extract_strided_slice %171 {offsets = [0, 0], sizes = [2, 1], strides = [1, 1]} : vector<2x4xf32> to vector<2x1xf32>
    %173 = vector.broadcast %172 : vector<2x1xf32> to vector<2x16xf32>
    %174 = arith.mulf %173, %10 : vector<2x16xf32>
    %175 = vector.extract_strided_slice %171 {offsets = [0, 1], sizes = [2, 1], strides = [1, 1]} : vector<2x4xf32> to vector<2x1xf32>
    %176 = vector.broadcast %175 : vector<2x1xf32> to vector<2x16xf32>
    %177 = arith.mulf %176, %13 : vector<2x16xf32>
    %178 = vector.extract_strided_slice %171 {offsets = [0, 2], sizes = [2, 1], strides = [1, 1]} : vector<2x4xf32> to vector<2x1xf32>
    %179 = vector.broadcast %178 : vector<2x1xf32> to vector<2x16xf32>
    %180 = arith.mulf %179, %16 : vector<2x16xf32>
    %181 = vector.extract_strided_slice %171 {offsets = [0, 3], sizes = [2, 1], strides = [1, 1]} : vector<2x4xf32> to vector<2x1xf32>
    %182 = vector.broadcast %181 : vector<2x1xf32> to vector<2x16xf32>
    %183 = arith.mulf %182, %19 : vector<2x16xf32>
    %184 = arith.addf %174, %177 : vector<2x16xf32>
    %185 = arith.addf %180, %183 : vector<2x16xf32>
    %186 = arith.addf %184, %185 : vector<2x16xf32>
    %187 = arith.addf %62, %186 : vector<2x16xf32>
    %188 = math.tanh %187 : vector<2x16xf32>
    %189 = arith.mulf %31, %188 : vector<2x16xf32>
    %190 = arith.addf %189, %42 : vector<2x16xf32>
    %191 = vector.extract_strided_slice %190 {offsets = [0, 0], sizes = [2, 4], strides = [1, 1]} : vector<2x16xf32> to vector<2x4xf32>
    %192 = vector.extract_strided_slice %190 {offsets = [0, 4], sizes = [2, 4], strides = [1, 1]} : vector<2x16xf32> to vector<2x4xf32>
    %193 = vector.extract_strided_slice %190 {offsets = [0, 8], sizes = [2, 4], strides = [1, 1]} : vector<2x16xf32> to vector<2x4xf32>
    %194 = vector.extract_strided_slice %190 {offsets = [0, 12], sizes = [2, 4], strides = [1, 1]} : vector<2x16xf32> to vector<2x4xf32>
    %195 = arith.mulf %192, %169 : vector<2x4xf32>
    %196 = arith.mulf %191, %193 : vector<2x4xf32>
    %197 = arith.addf %195, %196 : vector<2x4xf32>
    %198 = math.tanh %197 : vector<2x4xf32>
    %199 = arith.mulf %194, %198 : vector<2x4xf32>
    %200 = vector.extract_strided_slice %199 {offsets = [0, 0], sizes = [2, 1], strides = [1, 1]} : vector<2x4xf32> to vector<2x1xf32>
    %201 = vector.broadcast %200 : vector<2x1xf32> to vector<2x16xf32>
    %202 = arith.mulf %201, %10 : vector<2x16xf32>
    %203 = vector.extract_strided_slice %199 {offsets = [0, 1], sizes = [2, 1], strides = [1, 1]} : vector<2x4xf32> to vector<2x1xf32>
    %204 = vector.broadcast %203 : vector<2x1xf32> to vector<2x16xf32>
    %205 = arith.mulf %204, %13 : vector<2x16xf32>
    %206 = vector.extract_strided_slice %199 {offsets = [0, 2], sizes = [2, 1], strides = [1, 1]} : vector<2x4xf32> to vector<2x1xf32>
    %207 = vector.broadcast %206 : vector<2x1xf32> to vector<2x16xf32>
    %208 = arith.mulf %207, %16 : vector<2x16xf32>
    %209 = vector.extract_strided_slice %199 {offsets = [0, 3], sizes = [2, 1], strides = [1, 1]} : vector<2x4xf32> to vector<2x1xf32>
    %210 = vector.broadcast %209 : vector<2x1xf32> to vector<2x16xf32>
    %211 = arith.mulf %210, %19 : vector<2x16xf32>
    %212 = arith.addf %202, %205 : vector<2x16xf32>
    %213 = arith.addf %208, %211 : vector<2x16xf32>
    %214 = arith.addf %212, %213 : vector<2x16xf32>
    %215 = arith.addf %66, %214 : vector<2x16xf32>
    %216 = math.tanh %215 : vector<2x16xf32>
    %217 = arith.mulf %31, %216 : vector<2x16xf32>
    %218 = arith.addf %217, %42 : vector<2x16xf32>
    %219 = vector.extract_strided_slice %218 {offsets = [0, 0], sizes = [2, 4], strides = [1, 1]} : vector<2x16xf32> to vector<2x4xf32>
    %220 = vector.extract_strided_slice %218 {offsets = [0, 4], sizes = [2, 4], strides = [1, 1]} : vector<2x16xf32> to vector<2x4xf32>
    %221 = vector.extract_strided_slice %218 {offsets = [0, 8], sizes = [2, 4], strides = [1, 1]} : vector<2x16xf32> to vector<2x4xf32>
    %222 = vector.extract_strided_slice %218 {offsets = [0, 12], sizes = [2, 4], strides = [1, 1]} : vector<2x16xf32> to vector<2x4xf32>
    %223 = arith.mulf %220, %197 : vector<2x4xf32>
    %224 = arith.mulf %219, %221 : vector<2x4xf32>
    %225 = arith.addf %223, %224 : vector<2x4xf32>
    %226 = math.tanh %225 : vector<2x4xf32>
    %227 = arith.mulf %222, %226 : vector<2x4xf32>
    %228 = vector.extract_strided_slice %227 {offsets = [0, 0], sizes = [2, 1], strides = [1, 1]} : vector<2x4xf32> to vector<2x1xf32>
    %229 = vector.broadcast %228 : vector<2x1xf32> to vector<2x16xf32>
    %230 = arith.mulf %229, %10 : vector<2x16xf32>
    %231 = vector.extract_strided_slice %227 {offsets = [0, 1], sizes = [2, 1], strides = [1, 1]} : vector<2x4xf32> to vector<2x1xf32>
    %232 = vector.broadcast %231 : vector<2x1xf32> to vector<2x16xf32>
    %233 = arith.mulf %232, %13 : vector<2x16xf32>
    %234 = vector.extract_strided_slice %227 {offsets = [0, 2], sizes = [2, 1], strides = [1, 1]} : vector<2x4xf32> to vector<2x1xf32>
    %235 = vector.broadcast %234 : vector<2x1xf32> to vector<2x16xf32>
    %236 = arith.mulf %235, %16 : vector<2x16xf32>
    %237 = vector.extract_strided_slice %227 {offsets = [0, 3], sizes = [2, 1], strides = [1, 1]} : vector<2x4xf32> to vector<2x1xf32>
    %238 = vector.broadcast %237 : vector<2x1xf32> to vector<2x16xf32>
    %239 = arith.mulf %238, %19 : vector<2x16xf32>
    %240 = arith.addf %230, %233 : vector<2x16xf32>
    %241 = arith.addf %236, %239 : vector<2x16xf32>
    %242 = arith.addf %240, %241 : vector<2x16xf32>
    %243 = arith.addf %70, %242 : vector<2x16xf32>
    %244 = math.tanh %243 : vector<2x16xf32>
    %245 = arith.mulf %31, %244 : vector<2x16xf32>
    %246 = arith.addf %245, %42 : vector<2x16xf32>
    %247 = vector.extract_strided_slice %246 {offsets = [0, 0], sizes = [2, 4], strides = [1, 1]} : vector<2x16xf32> to vector<2x4xf32>
    %248 = vector.extract_strided_slice %246 {offsets = [0, 4], sizes = [2, 4], strides = [1, 1]} : vector<2x16xf32> to vector<2x4xf32>
    %249 = vector.extract_strided_slice %246 {offsets = [0, 8], sizes = [2, 4], strides = [1, 1]} : vector<2x16xf32> to vector<2x4xf32>
    %250 = vector.extract_strided_slice %246 {offsets = [0, 12], sizes = [2, 4], strides = [1, 1]} : vector<2x16xf32> to vector<2x4xf32>
    %251 = arith.mulf %248, %225 : vector<2x4xf32>
    %252 = arith.mulf %247, %249 : vector<2x4xf32>
    %253 = arith.addf %251, %252 : vector<2x4xf32>
    %254 = math.tanh %253 : vector<2x4xf32>
    %255 = arith.mulf %250, %254 : vector<2x4xf32>
    %256 = vector.extract_strided_slice %255 {offsets = [0, 0], sizes = [2, 1], strides = [1, 1]} : vector<2x4xf32> to vector<2x1xf32>
    %257 = vector.broadcast %256 : vector<2x1xf32> to vector<2x16xf32>
    %258 = arith.mulf %257, %10 : vector<2x16xf32>
    %259 = vector.extract_strided_slice %255 {offsets = [0, 1], sizes = [2, 1], strides = [1, 1]} : vector<2x4xf32> to vector<2x1xf32>
    %260 = vector.broadcast %259 : vector<2x1xf32> to vector<2x16xf32>
    %261 = arith.mulf %260, %13 : vector<2x16xf32>
    %262 = vector.extract_strided_slice %255 {offsets = [0, 2], sizes = [2, 1], strides = [1, 1]} : vector<2x4xf32> to vector<2x1xf32>
    %263 = vector.broadcast %262 : vector<2x1xf32> to vector<2x16xf32>
    %264 = arith.mulf %263, %16 : vector<2x16xf32>
    %265 = vector.extract_strided_slice %255 {offsets = [0, 3], sizes = [2, 1], strides = [1, 1]} : vector<2x4xf32> to vector<2x1xf32>
    %266 = vector.broadcast %265 : vector<2x1xf32> to vector<2x16xf32>
    %267 = arith.mulf %266, %19 : vector<2x16xf32>
    %268 = arith.addf %258, %261 : vector<2x16xf32>
    %269 = arith.addf %264, %267 : vector<2x16xf32>
    %270 = arith.addf %268, %269 : vector<2x16xf32>
    %271 = arith.addf %74, %270 : vector<2x16xf32>
    %272 = math.tanh %271 : vector<2x16xf32>
    %273 = arith.mulf %31, %272 : vector<2x16xf32>
    %274 = arith.addf %273, %42 : vector<2x16xf32>
    %275 = vector.extract_strided_slice %274 {offsets = [0, 0], sizes = [2, 4], strides = [1, 1]} : vector<2x16xf32> to vector<2x4xf32>
    %276 = vector.extract_strided_slice %274 {offsets = [0, 4], sizes = [2, 4], strides = [1, 1]} : vector<2x16xf32> to vector<2x4xf32>
    %277 = vector.extract_strided_slice %274 {offsets = [0, 8], sizes = [2, 4], strides = [1, 1]} : vector<2x16xf32> to vector<2x4xf32>
    %278 = vector.extract_strided_slice %274 {offsets = [0, 12], sizes = [2, 4], strides = [1, 1]} : vector<2x16xf32> to vector<2x4xf32>
    %279 = arith.mulf %276, %253 : vector<2x4xf32>
    %280 = arith.mulf %275, %277 : vector<2x4xf32>
    %281 = arith.addf %279, %280 : vector<2x4xf32>
    %282 = math.tanh %281 : vector<2x4xf32>
    %283 = arith.mulf %278, %282 : vector<2x4xf32>
    %284 = vector.broadcast %20 : vector<1x4xf32> to vector<2x4xf32>
    %285 = arith.mulf %283, %284 : vector<2x4xf32>
    %cst_11 = arith.constant dense<0.000000e+00> : vector<2xf32>
    %286 = vector.multi_reduction <add>, %285, %cst_11 [1] : vector<2x4xf32> to vector<2xf32>
    %287 = vector.shape_cast %286 : vector<2xf32> to vector<2x1xf32>
    %288 = vector.broadcast %21 : vector<1x1xf32> to vector<2x1xf32>
    %289 = arith.addf %287, %288 : vector<2x1xf32>
    %c0_12 = arith.constant 0 : index
    %c0_13 = arith.constant 0 : index
    %290 = vector.load %arg2[%c0_12, %c0_13] : memref<2x1xf32, #tpu.memory_space<vmem>>, vector<2x1xf32>
    tpu.vector_store %arg2[%c0_12, %c0_13], %289 {strides = array<i32>} : memref<2x1xf32, #tpu.memory_space<vmem>>, vector<2x1xf32>,
    return
  }
}

</mosaic_0001>

<bundles_post_ra>
// kernel: tpu_custom_call.1
= control target key start
LH: loop header
LB: loop body
LE: loop exit
PB: predicated region body
PF: predicated region fallthrough
CT: control target
= control target key end

     0   :  { %7 = vsyncpa [#allocation3], 0  ;;  %s793_s0 = inlined_call_operand.hbm [shape: f32[2,8], index: 0, kind: input, shape index: {}]   ;;  %s794_s1 = inlined_call_operand.hbm [shape: f32[7,16], index: 1, kind: input, shape index: {}]   ;;  %s795_s2 = inlined_call_operand.vmem [shape: f32[2,1], index: 2, kind: output, shape index: {}]  }
   0x1   :  { %s14_s11 = sshll.u32 %s793_s0, 4  ;;  %s15_s11 = int_to_ptr.hbm [resolvable:$true] %s14_s11 }
   0x2   :  { %8 = vsyncpa [#allocation5], 0  ;;  %s604_s12 = smov [#allocation2]   ;;  %s25_s16 = sshll.u32 %s794_s1, 4  ;;  %s26_s16 = int_to_ptr.hbm [resolvable:$true] %s25_s16 }
   0x3   :  { %s16_s13 = sshll.u32 %s604_s12, 4  ;;  %s605_s17 = smov [#allocation4]   ;;  %s17_s13 = int_to_ptr.vmem [resolvable:$true] %s16_s13 }
   0x4   :  { %19 = dma.hbm_to_vmem [thread:$0]  %s15_s11, 32, %s17_s13, [#allocation3]  }
   0x5   :  { %s27_s18 = sshll.u32 %s605_s17, 4  ;;  %s28_s18 = int_to_ptr.vmem [resolvable:$true] %s27_s18 }
   0x6   :  { %30 = dma.hbm_to_vmem [thread:$0]  %s26_s16, 128, %s28_s18, [#allocation5]  }
   0x7   :  { %600 = dma.done.wait [#allocation3], 32  }
   0x8   :  { %601 = vsyncadd [#allocation3], 4294967264 }
   0x9   :  { %602 = dma.done.wait [#allocation5], 128  }
   0xa   :  { %603 = vsyncadd [#allocation5], 4294967168  ;;  %v606_v0 = vmov 0   ;;  %v647_v1 = vld [vmem:[#allocation2] sm:$0x3]  ;;  %vm47_vm0 = vcmask 64512  }
   0xb   :  { %488 = vset.pattern.permute.xlu0 %v606_v0  ;;  %v650_v2 = vld [vmem:[#allocation4] sm:$0x7f]  ;;  %v607_v7 = vmov 1.0   ;;  %vm49_vm1 = vcmask 97280   ;;  %v608_v10 = vmov 0.0   ;;  %s609_s0 = smov 120  }
   0xc   :  { %57 = vperm.xlu0 %488, %v647_v1   ;;  %v653_v3 = vperm.slane %v650_v2, 0  ;;  %v656_v4 = vperm.slane %v650_v2, 1  ;;  %v48_v8 = vsel %vm47_vm0, 0.5, %v607_v7  ;;  %v52_v11 = vsel %vm47_vm0, 0.5, %v608_v10  ;;  %s610_s1 = smov 4   ;;  %s611_s19 = smov 8  }
   0xd   :  { %v50_v12 = vsel %vm49_vm1, %v48_v8, 0.5  ;;  %v53_v13 = vsel %vm49_vm1, %v52_v11, 0.5  ;;  %v612_v25 = vmov 15   ;;  %v613_v26 = vmov 12   ;;  %s623_s20 = smov 12   ;;  %s624_s21 = smov 116  }
   0xe   :  { %v660_v14 = vperm.slane %v50_v12, 0  ;;  %v662_v15 = vperm.slane %v53_v13, 0  ;;  %492 = vset.pattern.permute.xlu1 %v612_v25  ;;  %489 = vset.pattern.permute.xlu2 %v613_v26  ;;  %v614_v27 = vmov 14   ;;  %v615_v30 = vmov 13   ;;  %s625_s22 = smov 124  }
   0xf   :  { %v616_v31 = vmov 1   ;;  %v677_v34 = vperm.slane %v650_v2, 3  ;;  %v680_v36 = vperm.slane %v650_v2, 2  ;;  %v683_v37 = vperm.slane %v650_v2, 5 }
  0x10   :  { %v686_v38 = vperm.slane %v650_v2, 4  ;;  %v617_v62 = vmov 2   ;;  %vm449_vm2 = vcmask 25600   ;;  %vm458_vm3 = vcmask 1024  }
  0x14   :  { %491 = vset.pattern.permute.xlu0 %v614_v27 }
  0x7e   :  { %v58_v5 = vpop.permute.xlu0 %57 }
  0x7f   :  { %v60_v6 = vmul.f32 %v58_v5, %v653_v3 }
  0x81   :  { %v61_v9 = vadd.f32 %v60_v6, %v656_v4 }
  0x83   :  { %520 = vtanh.f32 %v61_v9 }
  0x89   :  { %v521_v16 = vpop.eup %520 }
  0x8a   :  { %v105_v17 = vmul.f32 %v521_v16, %v660_v14 }
  0x8c   :  { %v106_v18 = vadd.f32 %v105_v17, %v662_v15 }
  0x8e   :  { %109 = vrot.lane.b32.xlu0 %v106_v18, %s609_s0  ;;  %v107_v21 = vmul.f32 0.0, %v106_v18 }
 0x100   :  { %v110_v19 = vpop.permute.xlu0 %109 }
 0x101   :  { %v112_v20 = vmul.f32 %v110_v19, %v106_v18 }
 0x103   :  { %114 = vrot.lane.b32.xlu1 %v112_v20, %s610_s1 }
 0x175   :  { %v115_v22 = vpop.permute.xlu1 %114 }
 0x176   :  { %v117_v23 = vadd.f32 %v115_v22, %v107_v21 }
 0x178   :  { %522 = vtanh.f32 %v117_v23 }
 0x17e   :  { %v523_v24 = vpop.eup %522 }
 0x17f   :  { %120 = vrot.lane.b32.xlu1 %v523_v24, %s611_s19 }
 0x1f1   :  { %v121_v28 = vpop.permute.xlu1 %120 }
 0x1f2   :  { %v123_v29 = vmul.f32 %v121_v28, %v106_v18 }
 0x1f4   :  { %141 = vperm.xlu1 %492, %v123_v29   ;;  %136 = vperm.xlu0 %491, %v123_v29  }
 0x1f5   :  { %126 = vperm.xlu2 %489, %v123_v29  }
 0x1fc   :  { %494 = vset.pattern.permute.xlu1 %v613_v26 }
 0x1fd   :  { %490 = vset.pattern.permute.xlu2 %v615_v30 }
 0x1fe   :  { %131 = vperm.xlu2 %490, %v123_v29  }
 0x206   :  { %493 = vset.pattern.permute.xlu2 %v616_v31 }
 0x207   :  { %63 = vperm.xlu2 %493, %v647_v1  }
 0x20f   :  { %495 = vset.pattern.permute.xlu2 %v615_v30 }
 0x24f   :  { %v127_v32 = vpop.permute.xlu2 %126 }
 0x250   :  { %v129_v43 = vmul.f32 %v127_v32, %v680_v36 }
 0x258   :  { %v132_v33 = vpop.permute.xlu2 %131 }
 0x259   :  { %v134_v39 = vmul.f32 %v132_v33, %v677_v34 }
 0x25b   :  { %v145_v46 = vadd.f32 %v134_v39, %v129_v43  ;;  %v618_v39 = vmov 3  }
 0x261   :  { %v64_v35 = vpop.permute.xlu2 %63 }
 0x262   :  { %v66_v40 = vmul.f32 %v64_v35, %v653_v3 }
 0x264   :  { %v67_v48 = vadd.f32 %v66_v40, %v656_v4 }
 0x266   :  { %v142_v41 = vpop.permute.xlu1 %141  ;;  %v137_v42 = vpop.permute.xlu0 %136 }
 0x267   :  { %v144_v44 = vmul.f32 %v142_v41, %v683_v37  ;;  %v139_v45 = vmul.f32 %v137_v42, %v686_v38 }
 0x269   :  { %v146_v47 = vadd.f32 %v144_v44, %v139_v45 }
 0x26b   :  { %v147_v49 = vadd.f32 %v146_v47, %v145_v46 }
 0x26d   :  { %v148_v50 = vadd.f32 %v147_v49, %v67_v48 }
 0x26f   :  { %524 = vtanh.f32 %v148_v50 }
 0x275   :  { %v525_v51 = vpop.eup %524 }
 0x276   :  { %v150_v52 = vmul.f32 %v525_v51, %v660_v14 }
 0x278   :  { %v151_v53 = vadd.f32 %v150_v52, %v662_v15 }
 0x27a   :  { %154 = vrot.lane.b32.xlu1 %v151_v53, %s609_s0  ;;  %v152_v56 = vmul.f32 %v151_v53, %v117_v23 }
 0x2ec   :  { %v155_v54 = vpop.permute.xlu1 %154 }
 0x2ed   :  { %v157_v55 = vmul.f32 %v155_v54, %v151_v53 }
 0x2ef   :  { %159 = vrot.lane.b32.xlu2 %v157_v55, %s610_s1 }
 0x349   :  { %v160_v57 = vpop.permute.xlu2 %159 }
 0x34a   :  { %v162_v58 = vadd.f32 %v160_v57, %v152_v56 }
 0x34c   :  { %526 = vtanh.f32 %v162_v58 }
 0x352   :  { %v527_v59 = vpop.eup %526 }
 0x353   :  { %165 = vrot.lane.b32.xlu0 %v527_v59, %s611_s19 }
 0x3c5   :  { %v166_v60 = vpop.permute.xlu0 %165 }
 0x3c6   :  { %v168_v61 = vmul.f32 %v166_v60, %v151_v53 }
 0x3c8   :  { %181 = vperm.xlu0 %491, %v168_v61   ;;  %176 = vperm.xlu2 %495, %v168_v61  }
 0x3c9   :  { %171 = vperm.xlu1 %494, %v168_v61  }
 0x3d0   :  { %497 = vset.pattern.permute.xlu2 %v617_v62  ;;  %498 = vset.pattern.permute.xlu0 %v613_v26 }
 0x3d1   :  { %496 = vset.pattern.permute.xlu1 %v612_v25  ;;  %69 = vperm.xlu2 %497, %v647_v1  }
 0x3d2   :  { %186 = vperm.xlu1 %496, %v168_v61  }
 0x3d9   :  { %500 = vset.pattern.permute.xlu2 %v614_v27 }
 0x3da   :  { %499 = vset.pattern.permute.xlu1 %v615_v30 }
 0x422   :  { %v177_v63 = vpop.permute.xlu2 %176 }
 0x423   :  { %v179_v10 = vmul.f32 %v177_v63, %v677_v34 }
 0x42b   :  { %v70_v5 = vpop.permute.xlu2 %69 }
 0x42c   :  { %v72_v8 = vmul.f32 %v70_v5, %v653_v3 }
 0x42e   :  { %v73_v17 = vadd.f32 %v72_v8, %v656_v4 }
 0x43a   :  { %v182_v6 = vpop.permute.xlu0 %181 }
 0x43b   :  { %v172_v0 = vpop.permute.xlu1 %171  ;;  %v184_v11 = vmul.f32 %v182_v6, %v686_v38  ;;  %v619_v6 = vmov 4  }
 0x43c   :  { %v174_v7 = vmul.f32 %v172_v0, %v680_v36 }
 0x43e   :  { %v190_v13 = vadd.f32 %v179_v10, %v174_v7 }
 0x444   :  { %v187_v9 = vpop.permute.xlu1 %186 }
 0x445   :  { %v189_v12 = vmul.f32 %v187_v9, %v683_v37 }
 0x447   :  { %v191_v16 = vadd.f32 %v189_v12, %v184_v11 }
 0x449   :  { %v192_v18 = vadd.f32 %v191_v16, %v190_v13 }
 0x44b   :  { %v193_v19 = vadd.f32 %v192_v18, %v73_v17 }
 0x44d   :  { %528 = vtanh.f32 %v193_v19 }
 0x453   :  { %v529_v20 = vpop.eup %528 }
 0x454   :  { %v195_v21 = vmul.f32 %v529_v20, %v660_v14 }
 0x456   :  { %v196_v22 = vadd.f32 %v195_v21, %v662_v15 }
 0x458   :  { %199 = vrot.lane.b32.xlu0 %v196_v22, %s609_s0  ;;  %v197_v28 = vmul.f32 %v196_v22, %v162_v58 }
 0x4ca   :  { %v200_v23 = vpop.permute.xlu0 %199 }
 0x4cb   :  { %v202_v24 = vmul.f32 %v200_v23, %v196_v22 }
 0x4cd   :  { %204 = vrot.lane.b32.xlu1 %v202_v24, %s610_s1 }
 0x53f   :  { %v205_v29 = vpop.permute.xlu1 %204 }
 0x540   :  { %v207_v31 = vadd.f32 %v205_v29, %v197_v28 }
 0x542   :  { %530 = vtanh.f32 %v207_v31 }
 0x548   :  { %v531_v32 = vpop.eup %530 }
 0x549   :  { %210 = vrot.lane.b32.xlu2 %v531_v32, %s611_s19 }
 0x5a3   :  { %v211_v33 = vpop.permute.xlu2 %210 }
 0x5a4   :  { %v213_v35 = vmul.f32 %v211_v33, %v196_v22 }
 0x5a6   :  { %226 = vperm.xlu2 %500, %v213_v35   ;;  %221 = vperm.xlu1 %499, %v213_v35  }
 0x5a7   :  { %216 = vperm.xlu0 %498, %v213_v35  }
 0x5ae   :  { %501 = vset.pattern.permute.xlu1 %v612_v25  ;;  %502 = vset.pattern.permute.xlu2 %v618_v39 }
 0x5af   :  { %231 = vperm.xlu1 %501, %v213_v35   ;;  %75 = vperm.xlu2 %502, %v647_v1  }
 0x5b7   :  { %504 = vset.pattern.permute.xlu2 %v614_v27  ;;  %503 = vset.pattern.permute.xlu1 %v615_v30 }
 0x600   :  { %v227_v40 = vpop.permute.xlu2 %226 }
 0x601   :  { %v229_v48 = vmul.f32 %v227_v40, %v686_v38 }
 0x609   :  { %v76_v43 = vpop.permute.xlu2 %75 }
 0x60a   :  { %v78_v46 = vmul.f32 %v76_v43, %v653_v3  ;;  %v620_v43 = vmov 5  }
 0x60c   :  { %v79_v52 = vadd.f32 %v78_v46, %v656_v4 }
 0x618   :  { %v222_v41 = vpop.permute.xlu1 %221 }
 0x619   :  { %v217_v42 = vpop.permute.xlu0 %216  ;;  %v224_v44 = vmul.f32 %v222_v41, %v677_v34 }
 0x61a   :  { %v219_v45 = vmul.f32 %v217_v42, %v680_v36 }
 0x61c   :  { %v235_v50 = vadd.f32 %v224_v44, %v219_v45 }
 0x621   :  { %v232_v47 = vpop.permute.xlu1 %231 }
 0x622   :  { %v234_v49 = vmul.f32 %v232_v47, %v683_v37 }
 0x624   :  { %v236_v51 = vadd.f32 %v234_v49, %v229_v48 }
 0x626   :  { %v237_v53 = vadd.f32 %v236_v51, %v235_v50 }
 0x628   :  { %v238_v54 = vadd.f32 %v237_v53, %v79_v52 }
 0x62a   :  { %532 = vtanh.f32 %v238_v54 }
 0x630   :  { %v533_v55 = vpop.eup %532 }
 0x631   :  { %v240_v56 = vmul.f32 %v533_v55, %v660_v14 }
 0x633   :  { %v241_v57 = vadd.f32 %v240_v56, %v662_v15 }
 0x635   :  { %244 = vrot.lane.b32.xlu0 %v241_v57, %s609_s0  ;;  %v242_v60 = vmul.f32 %v241_v57, %v207_v31 }
 0x6a7   :  { %v245_v58 = vpop.permute.xlu0 %244 }
 0x6a8   :  { %v247_v59 = vmul.f32 %v245_v58, %v241_v57 }
 0x6aa   :  { %249 = vrot.lane.b32.xlu1 %v247_v59, %s610_s1 }
 0x71c   :  { %v250_v61 = vpop.permute.xlu1 %249 }
 0x71d   :  { %v252_v62 = vadd.f32 %v250_v61, %v242_v60 }
 0x71f   :  { %534 = vtanh.f32 %v252_v62 }
 0x725   :  { %v535_v63 = vpop.eup %534 }
 0x726   :  { %255 = vrot.lane.b32.xlu2 %v535_v63, %s611_s19 }
 0x780   :  { %v256_v0 = vpop.permute.xlu2 %255 }
 0x781   :  { %v258_v5 = vmul.f32 %v256_v0, %v241_v57 }
 0x783   :  { %271 = vperm.xlu2 %504, %v258_v5   ;;  %266 = vperm.xlu1 %503, %v258_v5  }
 0x784   :  { %261 = vperm.xlu0 %498, %v258_v5  }
 0x78b   :  { %506 = vset.pattern.permute.xlu1 %v619_v6 }
 0x78c   :  { %505 = vset.pattern.permute.xlu0 %v612_v25  ;;  %81 = vperm.xlu1 %506, %v647_v1  }
 0x78d   :  { %276 = vperm.xlu0 %505, %v258_v5  }
 0x794   :  { %508 = vset.pattern.permute.xlu1 %v615_v30 }
 0x795   :  { %507 = vset.pattern.permute.xlu0 %v613_v26 }
 0x7dd   :  { %v272_v9 = vpop.permute.xlu2 %271 }
 0x7de   :  { %v274_v17 = vmul.f32 %v272_v9, %v686_v38  ;;  %v621_v9 = vmov 6  }
 0x7f5   :  { %v267_v7 = vpop.permute.xlu1 %266 }
 0x7f6   :  { %v262_v8 = vpop.permute.xlu0 %261  ;;  %v269_v10 = vmul.f32 %v267_v7, %v677_v34 }
 0x7f7   :  { %v264_v11 = vmul.f32 %v262_v8, %v680_v36 }
 0x7f9   :  { %v280_v19 = vadd.f32 %v269_v10, %v264_v11 }
 0x7fe   :  { %v82_v12 = vpop.permute.xlu1 %81 }
 0x7ff   :  { %v277_v13 = vpop.permute.xlu0 %276  ;;  %v84_v16 = vmul.f32 %v82_v12, %v653_v3 }
 0x800   :  { %v279_v18 = vmul.f32 %v277_v13, %v683_v37 }
 0x801   :  { %v85_v21 = vadd.f32 %v84_v16, %v656_v4 }
 0x802   :  { %v281_v20 = vadd.f32 %v279_v18, %v274_v17 }
 0x804   :  { %v282_v22 = vadd.f32 %v281_v20, %v280_v19 }
 0x806   :  { %v283_v23 = vadd.f32 %v282_v22, %v85_v21 }
 0x808   :  { %536 = vtanh.f32 %v283_v23 }
 0x80e   :  { %v537_v24 = vpop.eup %536 }
 0x80f   :  { %v285_v28 = vmul.f32 %v537_v24, %v660_v14 }
 0x811   :  { %v286_v29 = vadd.f32 %v285_v28, %v662_v15 }
 0x813   :  { %289 = vrot.lane.b32.xlu2 %v286_v29, %s609_s0  ;;  %v287_v33 = vmul.f32 %v286_v29, %v252_v62 }
 0x86d   :  { %v290_v31 = vpop.permute.xlu2 %289 }
 0x86e   :  { %v292_v32 = vmul.f32 %v290_v31, %v286_v29 }
 0x870   :  { %294 = vrot.lane.b32.xlu1 %v292_v32, %s610_s1 }
 0x8e2   :  { %v295_v35 = vpop.permute.xlu1 %294 }
 0x8e3   :  { %v297_v39 = vadd.f32 %v295_v35, %v287_v33 }
 0x8e5   :  { %538 = vtanh.f32 %v297_v39 }
 0x8eb   :  { %v539_v40 = vpop.eup %538 }
 0x8ec   :  { %300 = vrot.lane.b32.xlu2 %v539_v40, %s611_s19 }
 0x946   :  { %v301_v41 = vpop.permute.xlu2 %300 }
 0x947   :  { %v303_v42 = vmul.f32 %v301_v41, %v286_v29 }
 0x949   :  { %316 = vperm.xlu2 %504, %v303_v42   ;;  %311 = vperm.xlu1 %508, %v303_v42  }
 0x94a   :  { %306 = vperm.xlu0 %507, %v303_v42  }
 0x951   :  { %509 = vset.pattern.permute.xlu1 %v612_v25  ;;  %510 = vset.pattern.permute.xlu2 %v620_v43 }
 0x952   :  { %321 = vperm.xlu1 %509, %v303_v42   ;;  %87 = vperm.xlu2 %510, %v647_v1  }
 0x95a   :  { %512 = vset.pattern.permute.xlu2 %v614_v27  ;;  %511 = vset.pattern.permute.xlu1 %v615_v30 }
 0x9a3   :  { %v317_v44 = vpop.permute.xlu2 %316 }
 0x9a4   :  { %v319_v52 = vmul.f32 %v317_v44, %v686_v38  ;;  %v622_v44 = vmov 7  }
 0x9ac   :  { %v88_v47 = vpop.permute.xlu2 %87 }
 0x9ad   :  { %v90_v50 = vmul.f32 %v88_v47, %v653_v3 }
 0x9af   :  { %v91_v27 = vadd.f32 %v90_v50, %v656_v4 }
 0x9bb   :  { %v312_v45 = vpop.permute.xlu1 %311 }
 0x9bc   :  { %v307_v46 = vpop.permute.xlu0 %306  ;;  %v314_v48 = vmul.f32 %v312_v45, %v677_v34 }
 0x9bd   :  { %v309_v49 = vmul.f32 %v307_v46, %v680_v36 }
 0x9bf   :  { %v325_v54 = vadd.f32 %v314_v48, %v309_v49 }
 0x9c4   :  { %v322_v51 = vpop.permute.xlu1 %321 }
 0x9c5   :  { %v324_v53 = vmul.f32 %v322_v51, %v683_v37 }
 0x9c7   :  { %v326_v55 = vadd.f32 %v324_v53, %v319_v52 }
 0x9c9   :  { %v327_v56 = vadd.f32 %v326_v55, %v325_v54 }
 0x9cb   :  { %v328_v57 = vadd.f32 %v327_v56, %v91_v27 }
 0x9cd   :  { %540 = vtanh.f32 %v328_v57 }
 0x9d3   :  { %v541_v58 = vpop.eup %540 }
 0x9d4   :  { %v330_v59 = vmul.f32 %v541_v58, %v660_v14 }
 0x9d6   :  { %v331_v60 = vadd.f32 %v330_v59, %v662_v15 }
 0x9d8   :  { %334 = vrot.lane.b32.xlu0 %v331_v60, %s609_s0  ;;  %v332_v63 = vmul.f32 %v331_v60, %v297_v39 }
 0xa4a   :  { %v335_v61 = vpop.permute.xlu0 %334 }
 0xa4b   :  { %v337_v62 = vmul.f32 %v335_v61, %v331_v60 }
 0xa4d   :  { %339 = vrot.lane.b32.xlu1 %v337_v62, %s610_s1 }
 0xabf   :  { %v340_v0 = vpop.permute.xlu1 %339 }
 0xac0   :  { %v342_v5 = vadd.f32 %v340_v0, %v332_v63 }
 0xac2   :  { %542 = vtanh.f32 %v342_v5 }
 0xac8   :  { %v543_v6 = vpop.eup %542 }
 0xac9   :  { %345 = vrot.lane.b32.xlu2 %v543_v6, %s611_s19 }
 0xb23   :  { %v346_v7 = vpop.permute.xlu2 %345 }
 0xb24   :  { %v348_v8 = vmul.f32 %v346_v7, %v331_v60 }
 0xb26   :  { %361 = vperm.xlu2 %512, %v348_v8   ;;  %356 = vperm.xlu1 %511, %v348_v8  }
 0xb27   :  { %351 = vperm.xlu0 %507, %v348_v8  }
 0xb2e   :  { %514 = vset.pattern.permute.xlu1 %v621_v9 }
 0xb2f   :  { %513 = vset.pattern.permute.xlu0 %v612_v25  ;;  %93 = vperm.xlu1 %514, %v647_v1  }
 0xb30   :  { %366 = vperm.xlu0 %513, %v348_v8  }
 0xb37   :  { %516 = vset.pattern.permute.xlu1 %v615_v30 }
 0xb38   :  { %515 = vset.pattern.permute.xlu0 %v613_v26 }
 0xb80   :  { %v362_v12 = vpop.permute.xlu2 %361 }
 0xb81   :  { %v364_v20 = vmul.f32 %v362_v12, %v686_v38 }
 0xb98   :  { %v357_v10 = vpop.permute.xlu1 %356 }
 0xb99   :  { %v352_v11 = vpop.permute.xlu0 %351  ;;  %v359_v13 = vmul.f32 %v357_v10, %v677_v34 }
 0xb9a   :  { %v354_v16 = vmul.f32 %v352_v11, %v680_v36 }
 0xb9c   :  { %v370_v22 = vadd.f32 %v359_v13, %v354_v16 }
 0xba1   :  { %v94_v17 = vpop.permute.xlu1 %93 }
 0xba2   :  { %v367_v18 = vpop.permute.xlu0 %366  ;;  %v96_v19 = vmul.f32 %v94_v17, %v653_v3 }
 0xba3   :  { %v369_v21 = vmul.f32 %v367_v18, %v683_v37 }
 0xba4   :  { %v97_v30 = vadd.f32 %v96_v19, %v656_v4 }
 0xba5   :  { %v371_v23 = vadd.f32 %v369_v21, %v364_v20 }
 0xba7   :  { %v372_v26 = vadd.f32 %v371_v23, %v370_v22 }
 0xba9   :  { %v373_v24 = vadd.f32 %v372_v26, %v97_v30 }
 0xbab   :  { %544 = vtanh.f32 %v373_v24 }
 0xbb1   :  { %v545_v28 = vpop.eup %544 }
 0xbb2   :  { %v375_v29 = vmul.f32 %v545_v28, %v660_v14 }
 0xbb4   :  { %v376_v31 = vadd.f32 %v375_v29, %v662_v15 }
 0xbb6   :  { %379 = vrot.lane.b32.xlu2 %v376_v31, %s609_s0  ;;  %v377_v35 = vmul.f32 %v376_v31, %v342_v5 }
 0xc10   :  { %v380_v32 = vpop.permute.xlu2 %379 }
 0xc11   :  { %v382_v33 = vmul.f32 %v380_v32, %v376_v31 }
 0xc13   :  { %384 = vrot.lane.b32.xlu1 %v382_v33, %s610_s1 }
 0xc85   :  { %v385_v39 = vpop.permute.xlu1 %384 }
 0xc86   :  { %v387_v40 = vadd.f32 %v385_v39, %v377_v35 }
 0xc88   :  { %546 = vtanh.f32 %v387_v40 }
 0xc8e   :  { %v547_v41 = vpop.eup %546 }
 0xc8f   :  { %390 = vrot.lane.b32.xlu2 %v547_v41, %s611_s19 }
 0xce9   :  { %v391_v42 = vpop.permute.xlu2 %390 }
 0xcea   :  { %v393_v43 = vmul.f32 %v391_v42, %v376_v31 }
 0xcec   :  { %406 = vperm.xlu2 %512, %v393_v43   ;;  %401 = vperm.xlu1 %516, %v393_v43  }
 0xced   :  { %396 = vperm.xlu0 %515, %v393_v43  }
 0xcf4   :  { %517 = vset.pattern.permute.xlu1 %v612_v25  ;;  %518 = vset.pattern.permute.xlu2 %v622_v44 }
 0xcf5   :  { %411 = vperm.xlu1 %517, %v393_v43   ;;  %99 = vperm.xlu2 %518, %v647_v1  }
 0xcf6   :  { %519 = vset.pattern.permute.xlu0 %v612_v25 }
 0xd46   :  { %v407_v45 = vpop.permute.xlu2 %406 }
 0xd47   :  { %v409_v53 = vmul.f32 %v407_v45, %v686_v38 }
 0xd4f   :  { %v100_v48 = vpop.permute.xlu2 %99 }
 0xd50   :  { %v102_v51 = vmul.f32 %v100_v48, %v653_v3  ;;  %v439_v3 = vperm.slane %v650_v2, 6 }
 0xd52   :  { %v103_v1 = vadd.f32 %v102_v51, %v656_v4 }
 0xd5e   :  { %v402_v46 = vpop.permute.xlu1 %401 }
 0xd5f   :  { %v397_v47 = vpop.permute.xlu0 %396  ;;  %v404_v49 = vmul.f32 %v402_v46, %v677_v34 }
 0xd60   :  { %v399_v50 = vmul.f32 %v397_v47, %v680_v36 }
 0xd62   :  { %v415_v55 = vadd.f32 %v404_v49, %v399_v50 }
 0xd67   :  { %v412_v52 = vpop.permute.xlu1 %411 }
 0xd68   :  { %v414_v54 = vmul.f32 %v412_v52, %v683_v37 }
 0xd6a   :  { %v416_v27 = vadd.f32 %v414_v54, %v409_v53 }
 0xd6c   :  { %v417_v25 = vadd.f32 %v416_v27, %v415_v55 }
 0xd6e   :  { %v418_v56 = vadd.f32 %v417_v25, %v103_v1 }
 0xd70   :  { %548 = vtanh.f32 %v418_v56 }
 0xd76   :  { %v549_v57 = vpop.eup %548 }
 0xd77   :  { %v420_v58 = vmul.f32 %v549_v57, %v660_v14 }
 0xd79   :  { %v421_v34 = vadd.f32 %v420_v58, %v662_v15 }
 0xd7b   :  { %424 = vrot.lane.b32.xlu0 %v421_v34, %s609_s0  ;;  %v422_v38 = vmul.f32 %v421_v34, %v387_v40 }
 0xd83   :  { %441 = vrot.lane.b32.xlu0 %v439_v3, %s623_s20 }
 0xded   :  { %v425_v36 = vpop.permute.xlu0 %424 }
 0xdee   :  { %v427_v37 = vmul.f32 %v425_v36, %v421_v34 }
 0xdf0   :  { %429 = vrot.lane.b32.xlu1 %v427_v37, %s610_s1 }
 0xdf5   :  { %v442_v61 = vpop.permute.xlu0 %441 }
 0xe62   :  { %v430_v4 = vpop.permute.xlu1 %429 }
 0xe63   :  { %v432_v59 = vadd.f32 %v430_v4, %v422_v38 }
 0xe65   :  { %550 = vtanh.f32 %v432_v59 }
 0xe6b   :  { %v551_v60 = vpop.eup %550 }
 0xe6c   :  { %435 = vrot.lane.b32.xlu2 %v551_v60, %s611_s19 }
 0xec6   :  { %v436_v14 = vpop.permute.xlu2 %435 }
 0xec7   :  { %v438_v15 = vmul.f32 %v436_v14, %v421_v34 }
 0xec9   :  { %v444_v62 = vmul.f32 %v442_v61, %v438_v15 }
 0xecb   :  { %446 = vrot.lane.b32.xlu1 %v444_v62, %s624_s21 }
 0xf3d   :  { %v447_v2 = vpop.permute.xlu1 %446 }
 0xf3e   :  { %v450_v63 = vsel %vm449_vm2, %v447_v2, 0.0 }
 0xf3f   :  { %451 = vadd.xlane.f32.xlu2 %v450_v63 }
 0xfb2   :  { %v452_v0 = vpop.xlane.xlu2 %451 }
 0xfb3   :  { %v453_v5 = vadd.f32 %v452_v0, %v439_v3 }
 0xfb5   :  { %455 = vrot.lane.b32.xlu0 %v453_v5, %s625_s22 }
0x1027   :  { %v456_v6 = vpop.permute.xlu0 %455 }
0x1028   :  { %459 = vst.msk [vmem:[%s795_s2] sm:$0x3] %vm458_vm3, %v456_v6 }
0x1029   :  { %464 = vsyncpa [#allocation3], 1 }
0x102a   :  { %465 = vsyncpa [#allocation5], 1 }

</bundles_post_ra>
